<compile_context>
chip_gen: v7x
topology: tpu7x:2x2x1
jax: 0.10.0
libtpu: 0.0.40
codegen_flags: <defaults>
</compile_context>

<pallas_src>
import functools

import jax
import jax.numpy as jnp
from jax.experimental import pallas as pl
from jax.experimental.pallas import tpu as pltpu

KK = 6        # number of dynamic-conv experts
TEMP = 31     # softmax temperature (TEMP % 3 == 1)
BN_EPS = 1e-5


# ------------------------------ Pallas kernels -------------------------------

def _attention_kernel(p_ref, w1_ref, w2_ref, b2_ref, att_ref, *, seq_len, temperature):
    """Fused attention2d:
       fc1 (im2col matmul) + BatchNorm1d (training-mode batch stats, gamma=1,
       beta=0) + ReLU + fc2 (Conv1d k=3/pad=1 as one fused 3-tap matmul) + bias
       + softmax over K with temperature.

       p:  (B*T, start_planes*kw) bf16    w1: (start_planes*kw, hidden) bf16
       w2: (3*hidden, K) bf16, rows ordered (tap, hidden), tap 0 == t-1
       b2: (1, K) f32                     att out: (B*T, K) f32, rows (b, t)
       NOTE: BN statistics span all B*T rows -> this kernel must stay a single
       un-gridded block.
    """
    h = jnp.dot(p_ref[...], w1_ref[...], preferred_element_type=jnp.float32)

    # BatchNorm1d over all (batch, time) rows per hidden channel (biased var).
    mu = jnp.mean(h, axis=0, keepdims=True)
    var = jnp.mean((h - mu) ** 2, axis=0, keepdims=True)
    h = jnp.maximum((h - mu) * jax.lax.rsqrt(var + BN_EPS), 0.0)

    # fc2 temporal taps: roll rows by +1 / -1 on the XLU (negative shift is
    # expressed as bt-1: pltpu.roll requires non-negative shifts) and zero the
    # rows that would read across a batch / sequence boundary.
    bt = h.shape[0]
    t = jax.lax.broadcasted_iota(jnp.int32, (bt, 1), 0) % seq_len
    h_prev = jnp.where(t > 0, pltpu.roll(h, 1, axis=0), 0.0)
    h_next = jnp.where(t < seq_len - 1, pltpu.roll(h, bt - 1, axis=0), 0.0)

    # One fused (B*T, 3*hidden) x (3*hidden, K) matmul for all three taps.
    hc = jnp.concatenate([h_prev, h, h_next], axis=1).astype(jnp.bfloat16)
    logits = (jnp.dot(hc, w2_ref[...], preferred_element_type=jnp.float32)
              + b2_ref[...]) * (1.0 / temperature)

    m = jnp.max(logits, axis=1, keepdims=True)
    e = jnp.exp(logits - m)
    att_ref[...] = e / jnp.sum(e, axis=1, keepdims=True)   # exact softmax rows


def _dynconv_kernel(x_ref, w_ref, att_ref, o_ref, *, th_rows, wp, kh, kw,
                    k_experts, out_planes):
    """Aggregate conv2d fused with the attention-weighted K-expert mixture for
    one (batch, output-row-tile) grid step.

       x:   (1, Hp*Wp + Wp, Cin)   bf16  padded NHWC input, (h, w) flattened
       w:   (kh*kw, Cin, K*out)    bf16  per-tap filters, columns ordered (k, out)
       att: (1, th_rows*Wp, K)     f32   attention broadcast over rows, 0 in junk cols
       o:   (1, th_rows*Wp, out)   f32   rows (oh, wp-col); cols >= Wout are junk
    """
    L = th_rows * wp
    r0 = pl.program_id(1) * th_rows

    # Conv as kh*kw accumulating tap matmuls over shifted row slabs.  Slab row
    # j maps to output position (oh = r0 + j // wp, ow = j % wp); the ow >= Wout
    # columns are junk and get dropped by the wrapper.
    acc = jnp.zeros((L, k_experts * out_planes), jnp.float32)
    for dh in range(kh):
        for dw in range(kw):
            start = (r0 + dh) * wp + dw
            xs = x_ref[0, pl.ds(start, L), :]                         # (L, Cin)
            acc += jnp.dot(xs, w_ref[dh * kw + dw],
                           preferred_element_type=jnp.float32)

    # Attention-weighted mixture over the K experts: per-expert lane-slice FMA.
    att = att_ref[0]                                                  # (L, K)
    out = att[:, 0:1] * acc[:, 0:out_planes]
    for k in range(1, k_experts):
        out += att[:, k:k + 1] * acc[:, k * out_planes:(k + 1) * out_planes]
    o_ref[0] = out                                                    # (L, out)


# ------------------------------ helpers --------------------------------------

def _im2col_1d(x, k, stride, pad):
    """x: (B, C, W) -> patches (B*T, C*k), feature order (c, tap)."""
    B, C, W = x.shape
    T = (W + 2 * pad - k) // stride + 1
    xp = jnp.pad(x, ((0, 0), (0, 0), (pad, pad)))
    taps = [xp[:, :, j:j + (T - 1) * stride + 1:stride] for j in range(k)]
    p = jnp.stack(taps, axis=-1)                 # (B, C, T, k)
    p = jnp.transpose(p, (0, 2, 1, 3))           # (B, T, C, k)
    return p.reshape(B * T, C * k), T


def _pick_row_tile(hout, wp, target_rows=512):
    """Pick an output-row tile: divides Hout, (tile*Wp) % 8 == 0, ~<= target
    rows, and prefer >= 2 tiles per image so the pipeline / both TensorCores
    have steady-state work."""
    cands = [d for d in range(1, hout + 1)
             if hout % d == 0 and (d * wp) % 8 == 0 and d * wp <= max(target_rows, wp)]
    small = [d for d in cands if d < hout]
    if small:
        return max(small)
    return max(cands) if cands else hout


# ------------------------------ forward wrapper -------------------------------

def dynamic_conv2d_forward(x, params, *, kernel_size, stride, padding, K, temperature):
    B, Cin, H, W = x.shape
    kh, kw = kernel_size
    sh, sw = stride
    ph, pw = padding
    out_planes = params["weight"].shape[1]
    # TODO(synk): general stride for the aggregate conv needs strided pl.ds tap
    # loads (or a dilated_patches fallback); only stride == (1, 1) is wired up.
    assert (sh, sw) == (1, 1), "Pallas dynconv path implemented for stride=(1,1)"

    # ---------------- attention branch (single fused kernel) ----------------
    x1d = x.reshape(B, Cin * H, W)                      # (B, start_planes, W)
    start_planes = Cin * H
    hidden = start_planes // 8
    p1, T = _im2col_1d(x1d, kw, sw, pw)                 # (B*T, start*kw)
    w1 = params["fc1_w"].reshape(hidden, start_planes * kw).T        # (start*kw, hidden)
    w2 = params["fc2_w"].transpose(2, 1, 0).reshape(3 * hidden, K)   # rows (tap, hidden)
    b2 = params["fc2_b"].reshape(1, K)

    att = pl.pallas_call(
        functools.partial(_attention_kernel, seq_len=T, temperature=float(temperature)),
        out_shape=jax.ShapeDtypeStruct((B * T, K), jnp.float32),
    )(p1.astype(jnp.bfloat16), w1.astype(jnp.bfloat16),
      w2.astype(jnp.bfloat16), b2)                      # rows = (b, t), softmax over K

    # ------ aggregate conv2d + einsum('bkcft,bkt->bcft'), grid (B, row tiles) ---
    Hout = (H + 2 * ph - kh) // sh + 1
    Wout = (W + 2 * pw - kw) // sw + 1
    assert T == Wout                                    # mirrors the PyTorch assert
    Hp, Wp = H + 2 * ph, W + 2 * pw

    # Padded NHWC input, (h, w) flattened; one extra zero row keeps the last
    # tap's full-length slab in bounds (no im2col blow-up is ever materialized).
    x_nhwc = jnp.transpose(x, (0, 2, 3, 1)).astype(jnp.bfloat16)      # (B, H, W, Cin)
    x_pad = jnp.pad(x_nhwc, ((0, 0), (ph, ph), (pw, pw), (0, 0)))     # (B, Hp, Wp, Cin)
    x_flat = jnp.pad(x_pad.reshape(B, Hp * Wp, Cin), ((0, 0), (0, Wp), (0, 0)))

    # Per-tap filters, pre-transposed / pre-cast once: (kh*kw, Cin, K*out) bf16.
    w_taps = (jnp.transpose(params["weight"], (3, 4, 2, 0, 1))
              .reshape(kh * kw, Cin, K * out_planes).astype(jnp.bfloat16))

    # Attention broadcast to the kernel's flat row layout (K=6 -> tiny in HBM),
    # zero in the junk columns ow in [Wout, Wp).
    att3 = att.reshape(B, T, K)
    att_pad = jnp.pad(att3, ((0, 0), (0, Wp - Wout), (0, 0)))         # (B, Wp, K)
    att_flat = jnp.broadcast_to(att_pad[:, None], (B, Hout, Wp, K)).reshape(B, Hout * Wp, K)

    th_rows = _pick_row_tile(Hout, Wp)
    n_ht = Hout // th_rows
    L = th_rows * Wp
    KO = K * out_planes
    CKK = Cin * kh * kw

    cost = pl.CostEstimate(
        flops=2 * B * Hout * Wp * CKK * KO + 2 * B * Hout * Wp * KO,
        transcendentals=0,
        bytes_accessed=(x_flat.size * 2 + w_taps.size * 2
                        + att_flat.size * 4 + B * Hout * Wp * out_planes * 4))

    out_flat = pl.pallas_call(
        functools.partial(_dynconv_kernel, th_rows=th_rows, wp=Wp, kh=kh, kw=kw,
                          k_experts=K, out_planes=out_planes),
        out_shape=jax.ShapeDtypeStruct((B, Hout * Wp, out_planes), jnp.float32),
        grid=(B, n_ht),
        in_specs=[
            # Full padded image per batch; the block index is constant across
            # the row-tile axis, so it is DMA'd once per image.
            pl.BlockSpec((1, Hp * Wp + Wp, Cin), lambda b, t: (b, 0, 0)),
            # Grid-invariant weights (fetched once).
            # TODO(synk): pipeline_mode=pl.Buffered(1) to drop the unused
            # second buffer once that knob is battle-tested at real sizes.
            pl.BlockSpec((kh * kw, Cin, KO), lambda b, t: (0, 0, 0)),
            pl.BlockSpec((1, L, K), lambda b, t: (b, t, 0)),
        ],
        out_specs=pl.BlockSpec((1, L, out_planes), lambda b, t: (b, t, 0)),
        compiler_params=pltpu.CompilerParams(
            dimension_semantics=("parallel", "parallel"),
            vmem_limit_bytes=64 * 1024 * 1024),
        cost_estimate=cost,
    )(x_flat, w_taps, att_flat)

    # Drop junk columns and permute to NCHW once, outside the kernel.
    out = out_flat.reshape(B, Hout, Wp, out_planes)[:, :, :Wout, :]
    out = jnp.transpose(out, (0, 3, 1, 2))              # (B, out, Hout, Wout)
    return out, att3.transpose(0, 2, 1)                 # att: (B, K, T)


# ------------------------------ parameters ------------------------------------

def init_params(key, in_planes, out_planes, map_size, kernel_size, K):
    """Deterministic Kaiming-style init (shapes match the PyTorch module)."""
    kh, kw = kernel_size
    start_planes = in_planes * map_size
    hidden = start_planes // 8
    k1, k2, k3 = jax.random.split(key, 3)
    fc1_w = jax.random.normal(k1, (hidden, start_planes, kw), jnp.float32) * jnp.sqrt(2.0 / (hidden * kw))
    fc2_w = jax.random.normal(k2, (K, hidden, 3), jnp.float32) * jnp.sqrt(2.0 / (K * 3))
    fc2_b = jnp.zeros((K,), jnp.float32)
    weight = jax.random.normal(k3, (K, out_planes, in_planes, kh, kw), jnp.float32) \
        * jnp.sqrt(2.0 / (in_planes * kh * kw))
    return dict(fc1_w=fc1_w, fc2_w=fc2_w, fc2_b=fc2_b, weight=weight)


# ------------------------------ pure-JAX reference ----------------------------

def reference_forward(x, params, *, kernel_size, stride, padding, K, temperature):
    B, Cin, H, W = x.shape
    out_planes = params["weight"].shape[1]
    kh, kw = kernel_size
    prec = jax.lax.Precision.HIGHEST

    x1d = x.reshape(B, Cin * H, W)
    h = jax.lax.conv_general_dilated(
        x1d[:, :, :, None], params["fc1_w"][:, :, :, None],
        window_strides=(stride[1], 1), padding=[(padding[1], padding[1]), (0, 0)],
        dimension_numbers=("NCHW", "OIHW", "NCHW"), precision=prec)[:, :, :, 0]
    mu = jnp.mean(h, axis=(0, 2), keepdims=True)
    var = jnp.mean((h - mu) ** 2, axis=(0, 2), keepdims=True)
    h = jnp.maximum((h - mu) / jnp.sqrt(var + BN_EPS), 0.0)
    logits = jax.lax.conv_general_dilated(
        h[:, :, :, None], params["fc2_w"][:, :, :, None],
        window_strides=(1, 1), padding=[(1, 1), (0, 0)],
        dimension_numbers=("NCHW", "OIHW", "NCHW"), precision=prec)[:, :, :, 0] \
        + params["fc2_b"][None, :, None]
    att = jax.nn.softmax(logits / temperature, axis=1)          # (B, K, T)

    wagg = params["weight"].reshape(K * out_planes, Cin, kh, kw)
    conv = jax.lax.conv_general_dilated(
        x, wagg, window_strides=stride,
        padding=[(padding[0], padding[0]), (padding[1], padding[1])],
        dimension_numbers=("NCHW", "OIHW", "NCHW"), precision=prec)
    Hout, Wout = conv.shape[-2:]
    conv = conv.reshape(B, K, out_planes, Hout, Wout)
    out = jnp.einsum("bkcft,bkt->bcft", conv, att)
    return out, att


# ------------------------------ main -------------------------------------------

if __name__ == "__main__":
    # Small shapes consistent with the module: map_size must equal H (attention
    # reshapes x to (B, Cin*H, W)); hidden = Cin*H // 8 = 16.
    B, Cin, H, W = 2, 8, 16, 16
    out_planes = 8
    map_size = H
    kernel_size = (3, 3)
    stride = (1, 1)
    padding = (1, 1)
    K = KK
    assert TEMP % 3 == 1

    key = jax.random.PRNGKey(0)
    kx, kp = jax.random.split(key)
    x = jax.random.normal(kx, (B, Cin, H, W), jnp.float32)
    params = init_params(kp, Cin, out_planes, map_size, kernel_size, K)

    out, att = dynamic_conv2d_forward(
        x, params, kernel_size=kernel_size, stride=stride,
        padding=padding, K=K, temperature=TEMP)
    out = jax.block_until_ready(out)

    # Sanity check against a pure-JAX (f32 HIGHEST) reference of the same math;
    # kernels use bf16 MXU operands with f32 accumulation, hence the 2e-2
    # output tolerance.
    ref_out, ref_att = reference_forward(
        x, params, kernel_size=kernel_size, stride=stride,
        padding=padding, K=K, temperature=TEMP)
    assert out.shape == (B, out_planes, H, W)
    assert att.shape == (B, K, W)
    assert jnp.allclose(att, ref_att, rtol=1e-2, atol=1e-2)
    assert jnp.allclose(out, ref_out, rtol=2e-2, atol=2e-2)

    print("KERNEL_OK")
</pallas_src>

<mosaic_0001>
module attributes {stable_mosaic.version = 11 : i64} {
  func.func @_attention_kernel(%arg0: memref<32x384xbf16, #tpu.memory_space<vmem>>, %arg1: memref<384x16xbf16, #tpu.memory_space<vmem>>, %arg2: memref<48x6xbf16, #tpu.memory_space<vmem>>, %arg3: memref<1x6xf32, #tpu.memory_space<vmem>>, %arg4: memref<32x6xf32, #tpu.memory_space<vmem>>) attributes {dimension_semantics = [], scalar_prefetch = 0 : i64, scratch_operands = 0 : i64, tpu.core_type = #tpu.core_type<tc>} {
    %c0 = arith.constant 0 : index
    %c0_0 = arith.constant 0 : index
    %0 = vector.load %arg0[%c0, %c0_0] : memref<32x384xbf16, #tpu.memory_space<vmem>>, vector<32x384xbf16>
    %c0_1 = arith.constant 0 : index
    %c0_2 = arith.constant 0 : index
    %1 = vector.load %arg1[%c0_1, %c0_2] : memref<384x16xbf16, #tpu.memory_space<vmem>>, vector<384x16xbf16>
    %cst = arith.constant dense<0.000000e+00> : vector<32x16xf32>
    %2 = tpu.matmul %0, %1, %cst {dimension_numbers = #tpu.dot_dimension_numbers<[1], [0], [0], [1], [0, 0, 1, 1], [], []>} : vector<32x384xbf16>, vector<384x16xbf16>, vector<32x16xf32> -> vector<32x16xf32>
    %cst_3 = arith.constant dense<0.000000e+00> : vector<16xf32>
    %3 = vector.multi_reduction <add>, %2, %cst_3 [0] : vector<32x16xf32> to vector<16xf32>
    %4 = vector.shape_cast %3 : vector<16xf32> to vector<1x16xf32>
    %cst_4 = arith.constant 3.200000e+01 : f32
    %5 = vector.broadcast %cst_4 : f32 to vector<1x16xf32>
    %6 = arith.divf %4, %5 : vector<1x16xf32>
    %7 = vector.broadcast %6 : vector<1x16xf32> to vector<32x16xf32>
    %8 = arith.subf %2, %7 : vector<32x16xf32>
    %9 = arith.mulf %8, %8 : vector<32x16xf32>
    %cst_5 = arith.constant dense<0.000000e+00> : vector<16xf32>
    %10 = vector.multi_reduction <add>, %9, %cst_5 [0] : vector<32x16xf32> to vector<16xf32>
    %11 = vector.shape_cast %10 : vector<16xf32> to vector<1x16xf32>
    %cst_6 = arith.constant 3.200000e+01 : f32
    %12 = vector.broadcast %cst_6 : f32 to vector<1x16xf32>
    %13 = arith.divf %11, %12 : vector<1x16xf32>
    %14 = vector.broadcast %6 : vector<1x16xf32> to vector<32x16xf32>
    %15 = arith.subf %2, %14 : vector<32x16xf32>
    %cst_7 = arith.constant 9.99999974E-6 : f32
    %16 = vector.broadcast %cst_7 : f32 to vector<1x16xf32>
    %17 = arith.addf %13, %16 : vector<1x16xf32>
    %18 = math.rsqrt %17 : vector<1x16xf32>
    %19 = vector.broadcast %18 : vector<1x16xf32> to vector<32x16xf32>
    %20 = arith.mulf %15, %19 : vector<32x16xf32>
    %cst_8 = arith.constant 0.000000e+00 : f32
    %21 = vector.broadcast %cst_8 : f32 to vector<32x16xf32>
    %22 = arith.maximumf %20, %21 : vector<32x16xf32>
    %23 = tpu.iota {dimensions = array<i32: 0>} : vector<32x1xi32>
    %c16_i32 = arith.constant 16 : i32
    %c0_i32 = arith.constant 0 : i32
    %24 = arith.cmpi eq, %c16_i32, %c0_i32 : i32
    %c1_i32 = arith.constant 1 : i32
    %25 = arith.select %24, %c1_i32, %c16_i32 : i32
    %26 = vector.broadcast %25 : i32 to vector<32x1xi32>
    %27 = arith.remsi %23, %26 : vector<32x1xi32>
    %c0_i32_9 = arith.constant 0 : i32
    %28 = vector.broadcast %c0_i32_9 : i32 to vector<32x1xi32>
    %29 = arith.cmpi ne, %27, %28 : vector<32x1xi32>
    %c0_i32_10 = arith.constant 0 : i32
    %30 = vector.broadcast %c0_i32_10 : i32 to vector<32x1xi32>
    %31 = arith.cmpi slt, %27, %30 : vector<32x1xi32>
    %c0_i32_11 = arith.constant 0 : i32
    %32 = arith.cmpi slt, %25, %c0_i32_11 : i32
    %33 = vector.broadcast %32 : i1 to vector<32x1xi1>
    %34 = vector.broadcast %33 : vector<32x1xi1> to vector<32x1xi1>
    %35 = arith.xori %31, %34 : vector<32x1xi1>
    %36 = arith.andi %35, %29 : vector<32x1xi1>
    %37 = vector.broadcast %25 : i32 to vector<32x1xi32>
    %38 = arith.addi %27, %37 : vector<32x1xi32>
    %39 = arith.select %36, %38, %27 : vector<32x1xi1>, vector<32x1xi32>
    %c0_i32_12 = arith.constant 0 : i32
    %40 = vector.broadcast %c0_i32_12 : i32 to vector<32x1xi32>
    %41 = arith.cmpi sgt, %39, %40 : vector<32x1xi32>
    %c1_i32_13 = arith.constant 1 : i32
    %42 = tpu.dynamic_rotate %22 by %c1_i32_13 dim 0 : vector<32x16xf32>, i32 -> vector<32x16xf32>
    %cst_14 = arith.constant 0.000000e+00 : f32
    %43 = vector.shape_cast %41 : vector<32x1xi1> to vector<32x1xi1>
    %44 = vector.broadcast %43 : vector<32x1xi1> to vector<32x16xi1>
    %45 = vector.broadcast %cst_14 : f32 to vector<32x16xf32>
    %46 = arith.select %44, %42, %45 : vector<32x16xi1>, vector<32x16xf32>
    %c15_i32 = arith.constant 15 : i32
    %47 = vector.broadcast %c15_i32 : i32 to vector<32x1xi32>
    %48 = arith.cmpi slt, %39, %47 : vector<32x1xi32>
    %c31_i32 = arith.constant 31 : i32
    %49 = tpu.dynamic_rotate %22 by %c31_i32 dim 0 : vector<32x16xf32>, i32 -> vector<32x16xf32>
    %cst_15 = arith.constant 0.000000e+00 : f32
    %50 = vector.shape_cast %48 : vector<32x1xi1> to vector<32x1xi1>
    %51 = vector.broadcast %50 : vector<32x1xi1> to vector<32x16xi1>
    %52 = vector.broadcast %cst_15 : f32 to vector<32x16xf32>
    %53 = arith.select %51, %49, %52 : vector<32x16xi1>, vector<32x16xf32>
    %54 = tpu.concatenate %46, %22, %53 in 1 : vector<32x16xf32>, vector<32x16xf32>, vector<32x16xf32> -> vector<32x48xf32>
    %55 = arith.truncf %54 : vector<32x48xf32> to vector<32x48xbf16>
    %c0_16 = arith.constant 0 : index
    %c0_17 = arith.constant 0 : index
    %56 = vector.load %arg2[%c0_16, %c0_17] : memref<48x6xbf16, #tpu.memory_space<vmem>>, vector<48x6xbf16>
    %cst_18 = arith.constant dense<0.000000e+00> : vector<32x6xf32>
    %57 = tpu.matmul %55, %56, %cst_18 {dimension_numbers = #tpu.dot_dimension_numbers<[1], [0], [0], [1], [0, 0, 1, 1], [], []>} : vector<32x48xbf16>, vector<48x6xbf16>, vector<32x6xf32> -> vector<32x6xf32>
    %c0_19 = arith.constant 0 : index
    %c0_20 = arith.constant 0 : index
    %58 = vector.load %arg3[%c0_19, %c0_20] : memref<1x6xf32, #tpu.memory_space<vmem>>, vector<1x6xf32>
    %59 = vector.broadcast %58 : vector<1x6xf32> to vector<32x6xf32>
    %60 = arith.addf %57, %59 : vector<32x6xf32>
    %cst_21 = arith.constant 0.0322580636 : f32
    %61 = vector.broadcast %cst_21 : f32 to vector<32x6xf32>
    %62 = arith.mulf %60, %61 : vector<32x6xf32>
    %cst_22 = arith.constant dense<0xFF800000> : vector<32xf32>
    %63 = vector.multi_reduction <maximumf>, %62, %cst_22 [1] : vector<32x6xf32> to vector<32xf32>
    %64 = vector.shape_cast %63 : vector<32xf32> to vector<32x1xf32>
    %65 = vector.broadcast %64 : vector<32x1xf32> to vector<32x6xf32>
    %66 = arith.subf %62, %65 : vector<32x6xf32>
    %67 = math.exp %66 : vector<32x6xf32>
    %cst_23 = arith.constant dense<0.000000e+00> : vector<32xf32>
    %68 = vector.multi_reduction <add>, %67, %cst_23 [1] : vector<32x6xf32> to vector<32xf32>
    %69 = vector.shape_cast %68 : vector<32xf32> to vector<32x1xf32>
    %70 = vector.broadcast %69 : vector<32x1xf32> to vector<32x6xf32>
    %71 = arith.divf %67, %70 : vector<32x6xf32>
    %c0_24 = arith.constant 0 : index
    %c0_25 = arith.constant 0 : index
    %72 = vector.load %arg4[%c0_24, %c0_25] : memref<32x6xf32, #tpu.memory_space<vmem>>, vector<32x6xf32>
    tpu.vector_store %arg4[%c0_24, %c0_25], %71 {strides = array<i32>} : memref<32x6xf32, #tpu.memory_space<vmem>>, vector<32x6xf32>,
    return
  }
}

</mosaic_0001>

<bundles_post_ra>
// kernel: tpu_custom_call.1
= control target key start
LH: loop header
LB: loop body
LE: loop exit
PB: predicated region body
PF: predicated region fallthrough
CT: control target
= control target key end

     0   :  { %vm348_vm0 = vcmask 130048   ;;  %s870_s27 = smov 16   ;;  %vm535_vm7 = vcmask 261120   ;;  %vm573_vm8 = vcmask 392192   ;;  %vm633_vm9 = vcmask 48128   ;;  %s1071_s1 = inlined_call_operand.vmem [shape: bf16[384,16], index: 1, kind: input, shape index: {}]   ;;  %s1072_s0 = inlined_call_operand.vmem [shape: bf16[32,384], index: 0, kind: input, shape index: {}]   ;;  %s1073_s2 = inlined_call_operand.vmem [shape: bf16[48,6], index: 2, kind: input, shape index: {}]   ;;  %s1074_s3 = inlined_call_operand.vmem [shape: f32[1,6], index: 3, kind: input, shape index: {}]   ;;  %s1075_s4 = inlined_call_operand.vmem [shape: f32[32,6], index: 4, kind: output, shape index: {}]  }
   0x1   :  { %v817_v0 = vld [vmem:[%s1071_s1 + $0x40] sm:$0xff]   ;;  %v820_v3 = vld [vmem:[%s1071_s1 + $0x48] sm:$0xff]   ;;  %v823_v6 = vld [vmem:[%s1071_s1 + $0x50] sm:$0xff]  }
   0x2   :  { %v818_v1 = vld [vmem:[%s1071_s1] sm:$0xff]   ;;  %722 = vmatprep.subr.bf16.mxu0 %v817_v0  ;;  %v821_v4 = vld [vmem:[%s1071_s1 + $0x8] sm:$0xff]   ;;  %v824_v7 = vld [vmem:[%s1071_s1 + $0x10] sm:$0xff]  }
   0x3   :  { %v819_v2 = vld [vmem:[%s1071_s1 + $0x80] sm:$0xff]   ;;  %723 = vmatpush3.bf16.msra.mxu0 %v818_v1  ;;  %v822_v5 = vld [vmem:[%s1071_s1 + $0x88] sm:$0xff]   ;;  %v825_v8 = vld [vmem:[%s1071_s1 + $0x90] sm:$0xff]  }
   0x4   :  { %765 = vmatprep.subr.bf16.mxu1 %v819_v2  ;;  %724 = vmatprep.subr.bf16.mxu0 %v820_v3  ;;  %v826_v9 = vld [vmem:[%s1071_s1 + $0x58] sm:$0xff]   ;;  %v829_v12 = vld [vmem:[%s1071_s1 + $0x60] sm:$0xff]   ;;  %v832_v15 = vld [vmem:[%s1071_s1 + $0x68] sm:$0xff]  }
   0x5   :  { %766 = vmatpush3.bf16.msra.mxu1 %v819_v2  ;;  %v827_v10 = vld [vmem:[%s1071_s1 + $0x18] sm:$0xff]   ;;  %v831_v13 = vld [vmem:[%s1071_s1 + $0xa0] sm:$0xff]   ;;  %v834_v16 = vld [vmem:[%s1071_s1 + $0xa8] sm:$0xff]  }
   0x6   :  { %767 = vmatprep.subr.bf16.mxu1 %v822_v5  ;;  %v828_v11 = vld [vmem:[%s1071_s1 + $0x98] sm:$0xff]   ;;  %v830_v14 = vld [vmem:[%s1071_s1 + $0x20] sm:$0xff]   ;;  %v833_v17 = vld [vmem:[%s1071_s1 + $0x28] sm:$0xff]  }
   0x7   :  { %725 = vmatpush3.bf16.msra.mxu0 %v821_v4  ;;  %v835_v18 = vld [vmem:[%s1071_s1 + $0x70] sm:$0xff]   ;;  %v838_v21 = vld [vmem:[%s1071_s1 + $0x78] sm:$0xff]   ;;  %v841_v26 = vld [vmem:[%s1072_s0] ss:$12 sps:$4 sm:$0xff]  }
   0x8   :  { %726 = vmatprep.subr.bf16.mxu0 %v823_v6  ;;  %v836_v19 = vld [vmem:[%s1071_s1 + $0x30] sm:$0xff]   ;;  %v840_v22 = vld [vmem:[%s1071_s1 + $0xb8] sm:$0xff]   ;;  %v845_v28 = vld [vmem:[%s1072_s0 + $0x20] ss:$12 sps:$4 sm:$0xff]  }
   0x9   :  { %768 = vmatpush3.bf16.msra.mxu1 %v822_v5  ;;  %v837_v20 = vld [vmem:[%s1071_s1 + $0xb0] sm:$0xff]   ;;  %v839_v25 = vld [vmem:[%s1071_s1 + $0x38] sm:$0xff]  }
   0xa   :  { %769 = vmatprep.subr.bf16.mxu1 %v825_v8  ;;  %v843_v23 = vld [vmem:[%s1072_s0 + $0x4] ss:$12 sps:$4 sm:$0xff]   ;;  %v844_v24 = vld [vmem:[%s1072_s0 + $0x8] ss:$12 sps:$4 sm:$0xff]  }
   0xb   :  { %727 = vmatpush3.bf16.msra.mxu0 %v824_v7  ;;  %282 = vmatprep.mubr.bf16.mxu0 %v843_v23  ;;  %v846_v27 = vld [vmem:[%s1072_s0 + $0x1c] ss:$12 sps:$4 sm:$0xff]   ;;  %v848_v29 = vld [vmem:[%s1072_s0 + $0x18] ss:$12 sps:$4 sm:$0xff]  }
   0xc   :  { %728 = vmatprep.subr.bf16.mxu0 %v826_v9  ;;  %781 = vmatprep.mubr.bf16.mxu1 %v844_v24 }
   0xd   :  { %770 = vmatpush3.bf16.msra.mxu1 %v825_v8 }
   0xe   :  { %771 = vmatprep.subr.bf16.mxu1 %v828_v11 }
   0xf   :  { %729 = vmatpush3.bf16.msra.mxu0 %v827_v10 }
  0x10   :  { %730 = vmatprep.subr.bf16.mxu0 %v829_v12 }
  0x11   :  { %772 = vmatpush3.bf16.msra.mxu1 %v828_v11 }
  0x12   :  { %773 = vmatprep.subr.bf16.mxu1 %v831_v13 }
  0x13   :  { %731 = vmatpush3.bf16.msra.mxu0 %v830_v14 }
  0x14   :  { %732 = vmatprep.subr.bf16.mxu0 %v832_v15 }
  0x15   :  { %774 = vmatpush3.bf16.msra.mxu1 %v831_v13 }
  0x16   :  { %775 = vmatprep.subr.bf16.mxu1 %v834_v16 }
  0x17   :  { %733 = vmatpush3.bf16.msra.mxu0 %v833_v17 }
  0x18   :  { %734 = vmatprep.subr.bf16.mxu0 %v835_v18 }
  0x19   :  { %776 = vmatpush3.bf16.msra.mxu1 %v834_v16 }
  0x1a   :  { %777 = vmatprep.subr.bf16.mxu1 %v837_v20 }
  0x1b   :  { %735 = vmatpush3.bf16.msra.mxu0 %v836_v19 }
  0x1c   :  { %736 = vmatprep.subr.bf16.mxu0 %v838_v21 }
  0x1d   :  { %778 = vmatpush3.bf16.msra.mxu1 %v837_v20 }
  0x1e   :  { %779 = vmatprep.subr.bf16.mxu1 %v840_v22 }
  0x1f   :  { %737 = vmatpush3.bf16.msra.mxu0 %v839_v25 }
  0x21   :  { %780 = vmatpush3.bf16.msra.mxu1 %v840_v22  ;;  %v396_v22 = vlaneseq }
  0x22   :  { %283 = vmatmul.mubr.bf16.vlgmr.msra.gmra.mrb[0].mxu0 %v841_v26 }
  0x23   :  { %290 = vmatprep.mubr.bf16.mxu0 %v846_v27  ;;  %v397_v24 = vshrl.u32 %v396_v22, 7  ;;  %v849_v27 = vld [vmem:[%s1073_s2] sm:$0xff]  }
  0x24   :  { %782 = vmatmul.mubr.bf16.vlgmr.msra.gmra.mrb[0].mxu1 %v845_v28  ;;  %785 = vmatprep.subr.bf16.mxu1 %v849_v27 }
  0x25   :  { %v398_v25 = vadd.s32 8, %v397_v24  ;;  %v400_v26 = vadd.s32 24, %v397_v24  ;;  %786 = vmatpush3.bf16.msra.mxu1 %v849_v27  ;;  %v399_v28 = vadd.s32 16, %v397_v24  ;;  %vm482_vm1 = vcmp.lt.s32.totalorder %v397_v24, 7 }
  0x26   :  { %vm457_vm5 = vcmp.lt.s32.totalorder %v397_v24, 1 }
  0x2a   :  { %291 = vmatmul.mubr.bf16.gmra.mrb[4].mxu0 %v848_v29 }
  0xf5   :  { %v738_v30 = vpop.f32.mrb[0].mxu0 }
  0xf6   :  { %v739_v31 = vpop.f32.mrb[1].mxu0 }
  0xf7   :  { %v740_v32 = vadd.f32 %v739_v31, %v738_v30  ;;  %v741_v33 = vpop.f32.mrb[2].mxu0  ;;  %v783_v34 = vpop.f32.mrb[0].mxu1  ;;  %v412_v30 = vand.u32 15, %v398_v25  ;;  %v426_v31 = vand.u32 15, %v400_v26 }
  0xf8   :  { %v742_v35 = vpop.f32.mrb[3].mxu0  ;;  %v333_v36 = vpop.f32.mrb[1].mxu1 }
  0xf9   :  { %v743_v37 = vadd.f32 %v742_v35, %v741_v33  ;;  %v334_v38 = vadd.f32 %v740_v32, %v333_v36  ;;  %v784_v39 = vpop.f32.mrb[2].mxu1  ;;  %v405_v32 = vand.u32 15, %v397_v24  ;;  %v850_v33 = vld [vmem:[%s1073_s2 + $0x8] sm:$0xff]   ;;  %vm1001_vm2 = vcmp.lt.s32.totalorder %v412_v30, 15  ;;  %v716_v30 = vld [vmem:[%s1074_s3] ss:$0 sm:$0xff] }
  0xfa   :  { %v336_v40 = vpop.f32.mrb[3].mxu1  ;;  %787 = vmatprep.subr.bf16.mxu1 %v850_v33  ;;  %vm1005_vm3 = vcmp.lt.s32.totalorder %v426_v31, 15 }
  0xfb   :  { %v337_v41 = vadd.f32 %v743_v37, %v336_v40  ;;  %v349_v42 = vsel %vm348_vm0, %v334_v38, 0.0  ;;  %788 = vmatpush3.bf16.msra.mxu1 %v850_v33  ;;  %vm1009_vm4 = vcmp.gt.s32.totalorder %v405_v32, 0 }
  0xfd   :  { %v350_v43 = vsel %vm348_vm0, %v337_v41, 0.0  ;;  %v744_v44 = vpop.f32.mrb[4].mxu0 }
  0xfe   :  { %v351_v45 = vadd.f32 %v350_v43, %v349_v42  ;;  %v745_v46 = vpop.f32.mrb[5].mxu0 }
  0xff   :  { %v746_v47 = vadd.f32 %v745_v46, %v744_v44  ;;  %v747_v48 = vpop.f32.mrb[6].mxu0  ;;  %v851_v46 = vld [vmem:[%s1073_s2 + $0x10] sm:$0xff]   ;;  %s871_s2 = smov 32  }
 0x100   :  { %v748_v49 = vpop.f32.mrb[7].mxu0  ;;  %789 = vmatprep.subr.bf16.mxu1 %v851_v46 }
 0x101   :  { %v342_v50 = vadd.f32 %v783_v34, %v746_v47  ;;  %v749_v51 = vadd.f32 %v748_v49, %v747_v48  ;;  %790 = vmatpush3.bf16.msra.mxu1 %v851_v46 }
 0x103   :  { %v352_v52 = vsel %vm348_vm0, %v342_v50, 0.0  ;;  %v345_v53 = vadd.f32 %v784_v39, %v749_v51 }
 0x104   :  { %v353_v54 = vadd.f32 %v352_v52, %v351_v45 }
 0x105   :  { %v354_v55 = vsel %vm348_vm0, %v345_v53, 0.0 }
 0x106   :  { %v355_v56 = vadd.f32 %v354_v55, %v353_v54 }
 0x108   :  { %v356_v57 = vrot.slane %v355_v56, 4 }
 0x10a   :  { %v357_v58 = vadd.f32 %v356_v57, %v355_v56 }
 0x10c   :  { %v358_v59 = vrot.slane %v357_v58, 2 }
 0x10e   :  { %v359_v60 = vadd.f32 %v358_v59, %v357_v58 }
 0x110   :  { %v360_v61 = vrot.slane %v359_v60, 1 }
 0x112   :  { %v361_v62 = vadd.f32 %v360_v61, %v359_v60 }
 0x114   :  { %v363_v63 = vmul.f32 0.03125, %v361_v62 }
 0x116   :  { %v364_v0 = vsub.f32 %v334_v38, %v363_v63  ;;  %v365_v1 = vsub.f32 %v337_v41, %v363_v63  ;;  %v366_v2 = vsub.f32 %v342_v50, %v363_v63  ;;  %v367_v3 = vsub.f32 %v345_v53, %v363_v63 }
 0x117   :  { %v419_v38 = vand.u32 15, %v399_v28 }
 0x118   :  { %v368_v4 = vmul.f32 %v364_v0, %v364_v0  ;;  %v369_v5 = vmul.f32 %v365_v1, %v365_v1  ;;  %v370_v6 = vmul.f32 %v366_v2, %v366_v2  ;;  %v371_v7 = vmul.f32 %v367_v3, %v367_v3 }
 0x119   :  { %vm1022_vm6 = vcmp.gt.s32.totalorder %v419_v38, 0 }
 0x11a   :  { %v372_v8 = vsel %vm348_vm0, %v368_v4, 0.0  ;;  %v373_v9 = vsel %vm348_vm0, %v369_v5, 0.0  ;;  %v375_v11 = vsel %vm348_vm0, %v370_v6, 0.0  ;;  %v377_v13 = vsel %vm348_vm0, %v371_v7, 0.0 }
 0x11b   :  { %v374_v10 = vadd.f32 %v373_v9, %v372_v8 }
 0x11d   :  { %v376_v12 = vadd.f32 %v375_v11, %v374_v10 }
 0x11f   :  { %v378_v14 = vadd.f32 %v377_v13, %v376_v12 }
 0x121   :  { %v379_v15 = vrot.slane %v378_v14, 4 }
 0x123   :  { %v380_v16 = vadd.f32 %v379_v15, %v378_v14 }
 0x125   :  { %v381_v17 = vrot.slane %v380_v16, 2 }
 0x127   :  { %v382_v18 = vadd.f32 %v381_v17, %v380_v16 }
 0x129   :  { %v383_v19 = vrot.slane %v382_v18, 1 }
 0x12b   :  { %v384_v20 = vadd.f32 %v383_v19, %v382_v18 }
 0x12d   :  { %v385_v21 = vmul.f32 0.03125, %v384_v20 }
 0x12f   :  { %v386_v23 = vadd.f32 1e-05, %v385_v21 }
 0x131   :  { %852 = vrsqrt.f32 %v386_v23 }
 0x13b   :  { %v853_v29 = vpop.eup %852 }
 0x13c   :  { %v391_v34 = vmul.f32 %v853_v29, %v367_v3  ;;  %v388_v35 = vmul.f32 %v853_v29, %v364_v0  ;;  %v389_v36 = vmul.f32 %v853_v29, %v365_v1  ;;  %v390_v37 = vmul.f32 %v853_v29, %v366_v2 }
 0x13e   :  { %v395_v39 = vmax.f32 %v391_v34, 0.0  ;;  %v392_v40 = vmax.f32 %v388_v35, 0.0  ;;  %v393_v41 = vmax.f32 %v389_v36, 0.0  ;;  %v394_v42 = vmax.f32 %v390_v37, 0.0 }
 0x140   :  { %v456_v47 = vrot.slane %v395_v39, 7  ;;  %v454_v48 = vrot.slane %v393_v41, 7  ;;  %v797_v49 = vpack.i.bf16 %v393_v41, %v392_v40  ;;  %v453_v50 = vrot.slane %v392_v40, 7 }
 0x141   :  { %v802_v51 = vpack.i.bf16 %v395_v39, %v394_v42  ;;  %v478_v52 = vrot.slane %v392_v40, 1  ;;  %v479_v53 = vrot.slane %v393_v41, 1  ;;  %v480_v54 = vrot.slane %v394_v42, 1 }
 0x142   :  { %798 = vrot.lane.b32.xlu0 %v797_v49, %s870_s27  ;;  %v481_v55 = vrot.slane %v395_v39, 1  ;;  %v460_v56 = vsel %vm457_vm5, %v453_v50, %v454_v48  ;;  %v461_v57 = vsel %vm457_vm5, %v456_v47, %v453_v50  ;;  %v455_v58 = vrot.slane %v394_v42, 7 }
 0x143   :  { %v484_v59 = vsel %vm482_vm1, %v479_v53, %v480_v54  ;;  %v485_v60 = vsel %vm482_vm1, %v478_v52, %v479_v53  ;;  %v470_v61 = vsel %vm1009_vm4, %v461_v57, 0.0 }
 0x144   :  { %v496_v63 = vsel %vm1001_vm2, %v484_v59, 0.0  ;;  %v483_v0 = vsel %vm482_vm1, %v480_v54, %v481_v55  ;;  %v486_v1 = vsel %vm482_vm1, %v481_v55, %v478_v52  ;;  %v458_v2 = vsel %vm457_vm5, %v455_v58, %v456_v47 }
 0x145   :  { %v807_v3 = vpack.i.bf16 %v496_v63, %v485_v60  ;;  %v498_v4 = vsel %vm1005_vm3, %v486_v1, 0.0  ;;  %v459_v5 = vsel %vm457_vm5, %v454_v48, %v455_v58 }
 0x146   :  { %803 = vrot.lane.b32.xlu0 %v802_v51, %s870_s27  ;;  %v812_v6 = vpack.i.bf16 %v498_v4, %v483_v0  ;;  %v472_v7 = vsel %vm1022_vm6, %v459_v5, 0.0 }
 0x147   :  { %808 = vrot.lane.b32.xlu1 %v807_v3, %s871_s2 }
 0x14b   :  { %813 = vrot.lane.b32.xlu1 %v812_v6, %s871_s2 }
 0x1b4   :  { %v799_v8 = vpop.permute.xlu0 %798 }
 0x1b5   :  { %v801_v9 = vunpack.i.h.bf16 %v799_v8  ;;  %v800_v10 = vunpack.i.l.bf16 %v799_v8 }
 0x1b7   :  { %v531_v15 = vsel %vm348_vm0, %v470_v61, %v800_v10  ;;  %v532_v16 = vsel %vm348_vm0, %v460_v56, %v801_v9 }
 0x1b8   :  { %v804_v11 = vpop.permute.xlu0 %803 }
 0x1b9   :  { %v809_v12 = vpop.permute.xlu1 %808  ;;  %v806_v17 = vunpack.i.h.bf16 %v804_v11  ;;  %v805_v18 = vunpack.i.l.bf16 %v804_v11 }
 0x1ba   :  { %v811_v13 = vunpack.i.h.bf16 %v809_v12  ;;  %v810_v14 = vunpack.i.l.bf16 %v809_v12 }
 0x1bb   :  { %v534_v25 = vsel %vm348_vm0, %v458_v2, %v806_v17  ;;  %v533_v26 = vsel %vm348_vm0, %v472_v7, %v805_v18 }
 0x1bc   :  { %v536_v19 = vsel %vm535_vm7, %v531_v15, %v810_v14  ;;  %v537_v20 = vsel %vm535_vm7, %v532_v16, %v811_v13 }
 0x1bd   :  { %v540_v21 = vpack.c.bf16 %v537_v20, %v536_v19  ;;  %v814_v22 = vpop.permute.xlu1 %813 }
 0x1be   :  { %v816_v23 = vunpack.i.h.bf16 %v814_v22  ;;  %v815_v24 = vunpack.i.l.bf16 %v814_v22 }
 0x1bf   :  { %791 = vmatprep.mubr.msk.bf16.mxu1 %vm573_vm8, %v540_v21 }
 0x1c0   :  { %v539_v27 = vsel %vm535_vm7, %v534_v25, %v816_v23  ;;  %v538_v28 = vsel %vm535_vm7, %v533_v26, %v815_v24 }
 0x1c1   :  { %v541_v29 = vpack.c.bf16 %v539_v27, %v538_v28 }
 0x1c3   :  { %792 = vmatmul.mubr.msk.bf16.vlgmr.msra.gmra.mrb[4].mxu1 %vm573_vm8, %v541_v29 }
 0x296   :  { %v793_v31 = vpop.f32.mrb[4].mxu1 }
 0x297   :  { %v614_v32 = vpop.f32.mrb[5].mxu1  ;;  %v623_v33 = vadd.f32 %v793_v31, %v716_v30 }
 0x298   :  { %v615_v34 = vadd.f32 %v716_v30, %v614_v32  ;;  %v794_v35 = vpop.f32.mrb[6].mxu1 }
 0x299   :  { %v617_v36 = vpop.f32.mrb[7].mxu1  ;;  %v631_v39 = vmul.f32 0.032258064, %v623_v33  ;;  %v626_v40 = vadd.f32 %v794_v35, %v716_v30 }
 0x29a   :  { %v629_v37 = vmul.f32 0.032258064, %v615_v34  ;;  %v618_v38 = vadd.f32 %v716_v30, %v617_v36 }
 0x29b   :  { %v632_v44 = vmul.f32 0.032258064, %v626_v40  ;;  %v640_v45 = vsel %vm633_vm9, %v631_v39, -inf }
 0x29c   :  { %v630_v41 = vmul.f32 0.032258064, %v618_v38  ;;  %v634_v42 = vsel %vm633_vm9, %v629_v37, -inf }
 0x29d   :  { %635 = vmax.xlane.f32.xlu0 %v634_v42  ;;  %v643_v46 = vsel %vm633_vm9, %v632_v44, -inf }
 0x29e   :  { %v637_v43 = vsel %vm633_vm9, %v630_v41, -inf }
 0x29f   :  { %638 = vmax.xlane.f32.xlu1 %v637_v43 }
 0x2a1   :  { %641 = vmax.xlane.f32.xlu0 %v640_v45 }
 0x2a5   :  { %644 = vmax.xlane.f32.xlu0 %v643_v46 }
 0x32a   :  { %v636_v47 = vpop.xlane.xlu0 %635 }
 0x32b   :  { %v646_v48 = vsub.f32 %v629_v37, %v636_v47 }
 0x32c   :  { %v639_v49 = vpop.xlane.xlu1 %638 }
 0x32d   :  { %v650_v50 = vmul.f32 1.442695, %v646_v48  ;;  %v647_v51 = vsub.f32 %v630_v41, %v639_v49 }
 0x32e   :  { %v642_v52 = vpop.xlane.xlu0 %641 }
 0x32f   :  { %854 = vpow2.f32 %v650_v50  ;;  %v652_v53 = vmul.f32 1.442695, %v647_v51  ;;  %v648_v54 = vsub.f32 %v631_v39, %v642_v52 }
 0x331   :  { %856 = vpow2.f32 %v652_v53  ;;  %v654_v55 = vmul.f32 1.442695, %v648_v54 }
 0x332   :  { %v645_v56 = vpop.xlane.xlu0 %644 }
 0x333   :  { %858 = vpow2.f32 %v654_v55  ;;  %v649_v57 = vsub.f32 %v632_v44, %v645_v56 }
 0x335   :  { %v656_v58 = vmul.f32 1.442695, %v649_v57 }
 0x337   :  { %860 = vpow2.f32 %v656_v58 }
 0x339   :  { %v855_v59 = vpop.eup %854 }
 0x33a   :  { %v658_v60 = vsel %vm633_vm9, %v855_v59, 0.0 }
 0x33b   :  { %v857_v61 = vpop.eup %856  ;;  %659 = vadd.xlane.f32.xlu1 %v658_v60 }
 0x33c   :  { %v661_v62 = vsel %vm633_vm9, %v857_v61, 0.0 }
 0x33d   :  { %v859_v63 = vpop.eup %858  ;;  %662 = vadd.xlane.f32.xlu0 %v661_v62 }
 0x33e   :  { %v664_v0 = vsel %vm633_vm9, %v859_v63, 0.0 }
 0x33f   :  { %665 = vadd.xlane.f32.xlu1 %v664_v0 }
 0x341   :  { %v861_v1 = vpop.eup %860 }
 0x342   :  { %v667_v2 = vsel %vm633_vm9, %v861_v1, 0.0 }
 0x343   :  { %668 = vadd.xlane.f32.xlu0 %v667_v2 }
 0x3c8   :  { %v660_v3 = vpop.xlane.xlu1 %659 }
 0x3c9   :  { %862 = vrcp.f32 %v660_v3 }
 0x3ca   :  { %v663_v4 = vpop.xlane.xlu0 %662 }
 0x3cb   :  { %864 = vrcp.f32 %v663_v4 }
 0x3cc   :  { %v666_v5 = vpop.xlane.xlu1 %665 }
 0x3cd   :  { %866 = vrcp.f32 %v666_v5 }
 0x3d0   :  { %v669_v6 = vpop.xlane.xlu0 %668 }
 0x3d1   :  { %868 = vrcp.f32 %v669_v6 }
 0x3d3   :  { %v863_v7 = vpop.eup %862 }
 0x3d4   :  { %v671_v8 = vmul.f32 %v863_v7, %v855_v59 }
 0x3d5   :  { %v865_v9 = vpop.eup %864 }
 0x3d6   :  { %678 = vst.msk [vmem:[%s1075_s4] sm:$0xff] %vm633_vm9, %v671_v8  ;;  %v673_v10 = vmul.f32 %v865_v9, %v857_v61 }
 0x3d7   :  { %v867_v11 = vpop.eup %866 }
 0x3d8   :  { %679 = vst.msk [vmem:[%s1075_s4 + $0x8] sm:$0xff] %vm633_vm9, %v673_v10  ;;  %v675_v12 = vmul.f32 %v867_v11, %v859_v63 }
 0x3da   :  { %680 = vst.msk [vmem:[%s1075_s4 + $0x10] sm:$0xff] %vm633_vm9, %v675_v12 }
 0x3db   :  { %v869_v13 = vpop.eup %868 }
 0x3dc   :  { %v677_v14 = vmul.f32 %v869_v13, %v861_v1 }
 0x3de   :  { %681 = vst.msk [vmem:[%s1075_s4 + $0x18] sm:$0xff] %vm633_vm9, %v677_v14 }

</bundles_post_ra>
